<compile_context>
chip_gen: v7x
topology: tpu7x:2x2x1
jax: 0.10.0
libtpu: 0.0.40
codegen_flags: <defaults>
</compile_context>

<pallas_src>
import functools

import jax
import jax.numpy as jnp
import numpy as np
from jax.experimental import pallas as pl
from jax.experimental.pallas import tpu as pltpu

MAX_TILE_N = 1024      # rows (lanes) per grid step; ~1 MB/tile of activations -> fits v7x 32 MiB scoped VMEM
LANE = 128


def _round_up(x, m):
    return (x + m - 1) // m * m


def gru_memory_updater_kernel(
    dt_ref, mem_input_ref, mem_ref, hfeat_ref,          # activations, (feature, TILE_N)
    time_w_ref, time_b_ref,                              # (dim_time, 1)
    w_ih_ref, b_ih_ref, w_hh_ref, b_hh_ref,              # GRUCell params (torch layout)
    w_nf_ref, b_nf_ref,                                  # node_feat_map params
    upd_mem_ref, h_out_ref,                              # outputs, (H, TILE_N)
):
    H = mem_ref.shape[0]

    # ---- TimeEncode: cos(dt * w + b), feature-major -> (dim_time, T) f32 ----
    time_feat = jnp.cos(time_w_ref[...] * dt_ref[...] + time_b_ref[...])

    # ---- GRUCell -------------------------------------------------------------
    # x^T = cat([mem_input, time_feat]) along the feature (sublane) axis; one K=dim_in+dim_time matmul.
    x_t = jnp.concatenate(
        [mem_input_ref[...], time_feat.astype(mem_input_ref.dtype)], axis=0
    )
    gi = (
        jnp.dot(w_ih_ref[...], x_t, preferred_element_type=jnp.float32)
        + b_ih_ref[...]
    )                                                           # (3H, T) f32
    mem = mem_ref[...]                                          # (H, T) f32 (kept f32 for the blend)
    gh = (
        jnp.dot(w_hh_ref[...], mem.astype(w_hh_ref.dtype),
                preferred_element_type=jnp.float32)
        + b_hh_ref[...]
    )                                                           # (3H, T) f32

    # Gate splits are sublane slices at multiples of 8 -> no cross-lane shuffles.
    r = jax.nn.sigmoid(gi[0:H] + gh[0:H])
    z = jax.nn.sigmoid(gi[H:2 * H] + gh[H:2 * H])
    n = jnp.tanh(gi[2 * H:3 * H] + r * gh[2 * H:3 * H])
    new_mem = (1.0 - z) * n + z * mem

    upd_mem_ref[...] = new_mem

    # ---- combine_node_feature (dim_node_feat != dim_hid branch) -------------
    h_out_ref[...] = new_mem + (
        jnp.dot(w_nf_ref[...], hfeat_ref[...], preferred_element_type=jnp.float32)
        + b_nf_ref[...]
    )


@jax.jit
def gru_memory_updater(dt, mem_input, mem, h_feat, params):
    """dt:(N,1), mem_input:(N,dim_in), mem:(N,H), h_feat:(N,dim_node_feat) -> ((N,H),(N,H))."""
    (time_w, time_b, w_ih, b_ih, w_hh, b_hh, w_nf, b_nf) = params
    N, H = mem.shape
    dim_in = mem_input.shape[1]
    dim_time = time_w.shape[0]
    dim_nf = h_feat.shape[1]

    tile_n = min(MAX_TILE_N, _round_up(N, LANE))
    n_pad = _round_up(N, tile_n)
    grid = (n_pad // tile_n,)

    def to_cols(a, dtype):
        a_t = a.T.astype(dtype)                       # (feature, N)
        if n_pad != N:
            a_t = jnp.pad(a_t, ((0, 0), (0, n_pad - N)))
        return a_t

    dt_t = to_cols(dt, jnp.float32)                   # (1, n_pad)
    mi_t = to_cols(mem_input, jnp.bfloat16)           # (dim_in, n_pad)
    mem_t = to_cols(mem, jnp.float32)                 # (H, n_pad)
    hf_t = to_cols(h_feat, jnp.bfloat16)              # (dim_nf, n_pad)

    def row_spec(rows):
        return pl.BlockSpec((rows, tile_n), lambda i: (0, i))

    def const_spec(shape):
        return pl.BlockSpec(shape, lambda i: (0, 0))  # resident weights: same block every step

    # Advisory cost estimate for the XLA scheduler.
    flops = int(2 * n_pad * (3 * H * (dim_in + dim_time) + 3 * H * H + H * dim_nf)
                + 12 * n_pad * H)
    transcendentals = int(n_pad * (dim_time + 3 * H))
    bytes_accessed = int(
        dt_t.size * 4 + mi_t.size * 2 + mem_t.size * 4 + hf_t.size * 2
        + 2 * H * n_pad * 4
        + sum(int(np.prod(p.shape)) * p.dtype.itemsize for p in params)
    )

    call = pl.pallas_call(
        gru_memory_updater_kernel,
        grid=grid,
        out_shape=(
            jax.ShapeDtypeStruct((H, n_pad), jnp.float32),   # last_updated_memory^T
            jax.ShapeDtypeStruct((H, n_pad), jnp.float32),   # srcdata['h']^T
        ),
        in_specs=[
            row_spec(1),            # dt^T
            row_spec(dim_in),       # mem_input^T
            row_spec(H),            # mem^T
            row_spec(dim_nf),       # h_feat^T
            const_spec(time_w.shape),
            const_spec(time_b.shape),
            const_spec(w_ih.shape),
            const_spec(b_ih.shape),
            const_spec(w_hh.shape),
            const_spec(b_hh.shape),
            const_spec(w_nf.shape),
            const_spec(b_nf.shape),
        ],
        out_specs=(
            pl.BlockSpec((H, tile_n), lambda i: (0, i)),
            pl.BlockSpec((H, tile_n), lambda i: (0, i)),
        ),
        input_output_aliases={2: 0},      # mem buffer reused for updated memory
        compiler_params=pltpu.CompilerParams(
            dimension_semantics=("parallel",),
            vmem_limit_bytes=32 * 1024 * 1024,
        ),
        cost_estimate=pl.CostEstimate(
            flops=flops, transcendentals=transcendentals, bytes_accessed=bytes_accessed
        ),
    )
    upd_t, h_t = call(dt_t, mi_t, mem_t, hf_t,
                      time_w, time_b, w_ih, b_ih, w_hh, b_hh, w_nf, b_nf)
    return upd_t[:, :N].T, h_t[:, :N].T


def make_params(key, dim_in, dim_hid, dim_time, dim_node_feat):
    """Deterministic synthetic parameters in the torch module's native layouts."""
    ks = jax.random.split(key, 6)
    dim_x = dim_in + dim_time
    scale = 1.0 / np.sqrt(dim_hid)

    # torch.nn.GRUCell: weight_ih (3H, dim_x), weight_hh (3H, H), biases (3H,)
    w_ih = jax.random.uniform(ks[0], (3 * dim_hid, dim_x), jnp.float32, -scale, scale)
    w_hh = jax.random.uniform(ks[1], (3 * dim_hid, dim_hid), jnp.float32, -scale, scale)
    b_ih = jax.random.uniform(ks[2], (3 * dim_hid,), jnp.float32, -scale, scale)
    b_hh = jax.random.uniform(ks[3], (3 * dim_hid,), jnp.float32, -scale, scale)

    # TimeEncode: Linear(1, dim_time) with fixed 1/10^linspace(0,9,dim) weights, zero bias
    time_w = (1.0 / 10.0 ** jnp.linspace(0.0, 9.0, dim_time)).astype(jnp.float32)
    time_b = jnp.zeros((dim_time,), jnp.float32)

    # node_feat_map: Linear(dim_node_feat, dim_hid)
    nf_scale = 1.0 / np.sqrt(dim_node_feat)
    w_nf = jax.random.uniform(ks[4], (dim_hid, dim_node_feat), jnp.float32, -nf_scale, nf_scale)
    b_nf = jax.random.uniform(ks[5], (dim_hid,), jnp.float32, -nf_scale, nf_scale)

    return (
        time_w.reshape(dim_time, 1),
        time_b.reshape(dim_time, 1),
        w_ih.astype(jnp.bfloat16),            # (3H, dim_in+dim_time), torch layout
        b_ih.reshape(3 * dim_hid, 1),
        w_hh.astype(jnp.bfloat16),            # (3H, H), torch layout
        b_hh.reshape(3 * dim_hid, 1),
        w_nf.astype(jnp.bfloat16),            # (H, dim_node_feat), torch layout
        b_nf.reshape(dim_hid, 1),
    )


def reference(dt, mem_input, mem, h_feat, params):
    """Pure-JAX reference mirroring the PyTorch forward (same bf16 matmul-operand policy)."""
    (time_w, time_b, w_ih, b_ih, w_hh, b_hh, w_nf, b_nf) = params
    H = mem.shape[1]
    time_feat = jnp.cos(dt * time_w.reshape(1, -1) + time_b.reshape(1, -1))
    x = jnp.concatenate([mem_input.astype(jnp.bfloat16),
                         time_feat.astype(jnp.bfloat16)], axis=1)
    gi = jnp.dot(x, w_ih.T, preferred_element_type=jnp.float32) + b_ih.reshape(1, -1)
    gh = jnp.dot(mem.astype(jnp.bfloat16), w_hh.T,
                 preferred_element_type=jnp.float32) + b_hh.reshape(1, -1)
    r = jax.nn.sigmoid(gi[:, :H] + gh[:, :H])
    z = jax.nn.sigmoid(gi[:, H:2 * H] + gh[:, H:2 * H])
    n = jnp.tanh(gi[:, 2 * H:] + r * gh[:, 2 * H:])
    new_mem = (1.0 - z) * n + z * mem
    h_out = new_mem + (jnp.dot(h_feat.astype(jnp.bfloat16), w_nf.T,
                               preferred_element_type=jnp.float32) + b_nf.reshape(1, -1))
    return new_mem, h_out


if __name__ == "__main__":
    N = 16               # number of src nodes in the MFG block
    dim_in = 32          # memory-input (message) dim
    dim_hid = 32         # memory / hidden dim
    dim_time = 32        # time-encoding dim
    dim_node_feat = 16   # node feature dim (!= dim_hid -> node_feat_map branch)

    key = jax.random.PRNGKey(0)
    k_p, k_dt, k_mi, k_mem, k_h = jax.random.split(key, 5)

    params = make_params(k_p, dim_in, dim_hid, dim_time, dim_node_feat)

    ts = jax.random.uniform(k_dt, (N,), jnp.float32, 0.0, 100.0)
    mem_ts = ts - jax.random.uniform(jax.random.fold_in(k_dt, 1), (N,), jnp.float32, 0.0, 10.0)
    dt = (ts - mem_ts).reshape(N, 1)                         # b.srcdata['ts'] - b.srcdata['mem_ts']
    mem_input = jax.random.normal(k_mi, (N, dim_in), jnp.float32)
    mem = jax.random.normal(k_mem, (N, dim_hid), jnp.float32)
    h_feat = jax.random.normal(k_h, (N, dim_node_feat), jnp.float32)

    upd_mem, h_out = gru_memory_updater(dt, mem_input, mem, h_feat, params)
    jax.block_until_ready((upd_mem, h_out))

    ref_mem, ref_h = reference(dt, mem_input, mem, h_feat, params)
    np.testing.assert_allclose(np.asarray(upd_mem), np.asarray(ref_mem), rtol=2e-3, atol=2e-3)
    np.testing.assert_allclose(np.asarray(h_out), np.asarray(ref_h), rtol=2e-3, atol=2e-3)

    print("KERNEL_OK")
</pallas_src>

<mosaic_0001>
module attributes {stable_mosaic.version = 11 : i64} {
  func.func @gru_memory_updater_kernel(%arg0: i32, %arg1: memref<1x128xf32, #tpu.memory_space<vmem>>, %arg2: memref<32x128xbf16, #tpu.memory_space<vmem>>, %arg3: memref<32x128xf32, #tpu.memory_space<vmem>>, %arg4: memref<16x128xbf16, #tpu.memory_space<vmem>>, %arg5: memref<32x1xf32, #tpu.memory_space<vmem>>, %arg6: memref<32x1xf32, #tpu.memory_space<vmem>>, %arg7: memref<96x64xbf16, #tpu.memory_space<vmem>>, %arg8: memref<96x1xf32, #tpu.memory_space<vmem>>, %arg9: memref<96x32xbf16, #tpu.memory_space<vmem>>, %arg10: memref<96x1xf32, #tpu.memory_space<vmem>>, %arg11: memref<32x16xbf16, #tpu.memory_space<vmem>>, %arg12: memref<32x1xf32, #tpu.memory_space<vmem>>, %arg13: memref<32x128xf32, #tpu.memory_space<vmem>>, %arg14: memref<32x128xf32, #tpu.memory_space<vmem>>) attributes {dimension_semantics = [#tpu.dimension_semantics<parallel>], iteration_bounds = array<i64: 1>, scalar_prefetch = 0 : i64, scratch_operands = 0 : i64, tpu.core_type = #tpu.core_type<tc>, window_params = [{transform_indices = @transform_0, window_bounds = array<i64: 1, 128>}, {transform_indices = @transform_1, window_bounds = array<i64: 32, 128>}, {transform_indices = @transform_2, window_bounds = array<i64: 32, 128>}, {transform_indices = @transform_3, window_bounds = array<i64: 16, 128>}, {pipeline_mode = #tpu.pipeline_mode<synchronous>, transform_indices = @transform_4, window_bounds = array<i64: 32, 1>}, {pipeline_mode = #tpu.pipeline_mode<synchronous>, transform_indices = @transform_5, window_bounds = array<i64: 32, 1>}, {pipeline_mode = #tpu.pipeline_mode<synchronous>, transform_indices = @transform_6, window_bounds = array<i64: 96, 64>}, {pipeline_mode = #tpu.pipeline_mode<synchronous>, transform_indices = @transform_7, window_bounds = array<i64: 96, 1>}, {pipeline_mode = #tpu.pipeline_mode<synchronous>, transform_indices = @transform_8, window_bounds = array<i64: 96, 32>}, {pipeline_mode = #tpu.pipeline_mode<synchronous>, transform_indices = @transform_9, window_bounds = array<i64: 96, 1>}, {pipeline_mode = #tpu.pipeline_mode<synchronous>, transform_indices = @transform_10, window_bounds = array<i64: 32, 16>}, {pipeline_mode = #tpu.pipeline_mode<synchronous>, transform_indices = @transform_11, window_bounds = array<i64: 32, 1>}, {transform_indices = @transform_12, window_bounds = array<i64: 32, 128>}, {transform_indices = @transform_13, window_bounds = array<i64: 32, 128>}]} {
    %c0 = arith.constant 0 : index
    %c0_0 = arith.constant 0 : index
    %0 = vector.load %arg5[%c0, %c0_0] : memref<32x1xf32, #tpu.memory_space<vmem>>, vector<32x1xf32>
    %c0_1 = arith.constant 0 : index
    %c0_2 = arith.constant 0 : index
    %1 = vector.load %arg1[%c0_1, %c0_2] : memref<1x128xf32, #tpu.memory_space<vmem>>, vector<1x128xf32>
    %2 = vector.broadcast %0 : vector<32x1xf32> to vector<32x128xf32>
    %3 = vector.broadcast %1 : vector<1x128xf32> to vector<32x128xf32>
    %4 = arith.mulf %2, %3 : vector<32x128xf32>
    %c0_3 = arith.constant 0 : index
    %c0_4 = arith.constant 0 : index
    %5 = vector.load %arg6[%c0_3, %c0_4] : memref<32x1xf32, #tpu.memory_space<vmem>>, vector<32x1xf32>
    %6 = vector.broadcast %5 : vector<32x1xf32> to vector<32x128xf32>
    %7 = arith.addf %4, %6 : vector<32x128xf32>
    %8 = math.cos %7 : vector<32x128xf32>
    %c0_5 = arith.constant 0 : index
    %c0_6 = arith.constant 0 : index
    %9 = vector.load %arg2[%c0_5, %c0_6] : memref<32x128xbf16, #tpu.memory_space<vmem>>, vector<32x128xbf16>
    %10 = arith.truncf %8 : vector<32x128xf32> to vector<32x128xbf16>
    %11 = tpu.concatenate %9, %10 in 0 : vector<32x128xbf16>, vector<32x128xbf16> -> vector<64x128xbf16>
    %c0_7 = arith.constant 0 : index
    %c0_8 = arith.constant 0 : index
    %12 = vector.load %arg7[%c0_7, %c0_8] : memref<96x64xbf16, #tpu.memory_space<vmem>>, vector<96x64xbf16>
    %cst = arith.constant dense<0.000000e+00> : vector<96x128xf32>
    %13 = tpu.matmul %12, %11, %cst {dimension_numbers = #tpu.dot_dimension_numbers<[1], [0], [0], [1], [0, 0, 1, 1], [], []>} : vector<96x64xbf16>, vector<64x128xbf16>, vector<96x128xf32> -> vector<96x128xf32>
    %c0_9 = arith.constant 0 : index
    %c0_10 = arith.constant 0 : index
    %14 = vector.load %arg8[%c0_9, %c0_10] : memref<96x1xf32, #tpu.memory_space<vmem>>, vector<96x1xf32>
    %15 = vector.broadcast %14 : vector<96x1xf32> to vector<96x128xf32>
    %16 = arith.addf %13, %15 : vector<96x128xf32>
    %c0_11 = arith.constant 0 : index
    %c0_12 = arith.constant 0 : index
    %17 = vector.load %arg3[%c0_11, %c0_12] : memref<32x128xf32, #tpu.memory_space<vmem>>, vector<32x128xf32>
    %c0_13 = arith.constant 0 : index
    %c0_14 = arith.constant 0 : index
    %18 = vector.load %arg9[%c0_13, %c0_14] : memref<96x32xbf16, #tpu.memory_space<vmem>>, vector<96x32xbf16>
    %19 = arith.truncf %17 : vector<32x128xf32> to vector<32x128xbf16>
    %cst_15 = arith.constant dense<0.000000e+00> : vector<96x128xf32>
    %20 = tpu.matmul %18, %19, %cst_15 {dimension_numbers = #tpu.dot_dimension_numbers<[1], [0], [0], [1], [0, 0, 1, 1], [], []>} : vector<96x32xbf16>, vector<32x128xbf16>, vector<96x128xf32> -> vector<96x128xf32>
    %c0_16 = arith.constant 0 : index
    %c0_17 = arith.constant 0 : index
    %21 = vector.load %arg10[%c0_16, %c0_17] : memref<96x1xf32, #tpu.memory_space<vmem>>, vector<96x1xf32>
    %22 = vector.broadcast %21 : vector<96x1xf32> to vector<96x128xf32>
    %23 = arith.addf %20, %22 : vector<96x128xf32>
    %24 = vector.extract_strided_slice %16 {offsets = [0, 0], sizes = [32, 128], strides = [1, 1]} : vector<96x128xf32> to vector<32x128xf32>
    %25 = vector.extract_strided_slice %23 {offsets = [0, 0], sizes = [32, 128], strides = [1, 1]} : vector<96x128xf32> to vector<32x128xf32>
    %26 = arith.addf %24, %25 : vector<32x128xf32>
    %27 = arith.negf %26 : vector<32x128xf32>
    %28 = math.exp %27 : vector<32x128xf32>
    %cst_18 = arith.constant 1.000000e+00 : f32
    %29 = vector.broadcast %cst_18 : f32 to vector<32x128xf32>
    %30 = arith.addf %29, %28 : vector<32x128xf32>
    %31 = arith.divf %29, %30 : vector<32x128xf32>
    %32 = vector.extract_strided_slice %16 {offsets = [32, 0], sizes = [32, 128], strides = [1, 1]} : vector<96x128xf32> to vector<32x128xf32>
    %33 = vector.extract_strided_slice %23 {offsets = [32, 0], sizes = [32, 128], strides = [1, 1]} : vector<96x128xf32> to vector<32x128xf32>
    %34 = arith.addf %32, %33 : vector<32x128xf32>
    %35 = arith.negf %34 : vector<32x128xf32>
    %36 = math.exp %35 : vector<32x128xf32>
    %cst_19 = arith.constant 1.000000e+00 : f32
    %37 = vector.broadcast %cst_19 : f32 to vector<32x128xf32>
    %38 = arith.addf %37, %36 : vector<32x128xf32>
    %39 = arith.divf %37, %38 : vector<32x128xf32>
    %40 = vector.extract_strided_slice %16 {offsets = [64, 0], sizes = [32, 128], strides = [1, 1]} : vector<96x128xf32> to vector<32x128xf32>
    %41 = vector.extract_strided_slice %23 {offsets = [64, 0], sizes = [32, 128], strides = [1, 1]} : vector<96x128xf32> to vector<32x128xf32>
    %42 = arith.mulf %31, %41 : vector<32x128xf32>
    %43 = arith.addf %40, %42 : vector<32x128xf32>
    %44 = math.tanh %43 : vector<32x128xf32>
    %cst_20 = arith.constant 1.000000e+00 : f32
    %45 = vector.broadcast %cst_20 : f32 to vector<32x128xf32>
    %46 = arith.subf %45, %39 : vector<32x128xf32>
    %47 = arith.mulf %46, %44 : vector<32x128xf32>
    %48 = arith.mulf %39, %17 : vector<32x128xf32>
    %49 = arith.addf %47, %48 : vector<32x128xf32>
    %c0_21 = arith.constant 0 : index
    %c0_22 = arith.constant 0 : index
    %50 = vector.load %arg13[%c0_21, %c0_22] : memref<32x128xf32, #tpu.memory_space<vmem>>, vector<32x128xf32>
    tpu.vector_store %arg13[%c0_21, %c0_22], %49 {strides = array<i32>} : memref<32x128xf32, #tpu.memory_space<vmem>>, vector<32x128xf32>,
    %c0_23 = arith.constant 0 : index
    %c0_24 = arith.constant 0 : index
    %51 = vector.load %arg11[%c0_23, %c0_24] : memref<32x16xbf16, #tpu.memory_space<vmem>>, vector<32x16xbf16>
    %c0_25 = arith.constant 0 : index
    %c0_26 = arith.constant 0 : index
    %52 = vector.load %arg4[%c0_25, %c0_26] : memref<16x128xbf16, #tpu.memory_space<vmem>>, vector<16x128xbf16>
    %cst_27 = arith.constant dense<0.000000e+00> : vector<32x128xf32>
    %53 = tpu.matmul %51, %52, %cst_27 {dimension_numbers = #tpu.dot_dimension_numbers<[1], [0], [0], [1], [0, 0, 1, 1], [], []>} : vector<32x16xbf16>, vector<16x128xbf16>, vector<32x128xf32> -> vector<32x128xf32>
    %c0_28 = arith.constant 0 : index
    %c0_29 = arith.constant 0 : index
    %54 = vector.load %arg12[%c0_28, %c0_29] : memref<32x1xf32, #tpu.memory_space<vmem>>, vector<32x1xf32>
    %55 = vector.broadcast %54 : vector<32x1xf32> to vector<32x128xf32>
    %56 = arith.addf %53, %55 : vector<32x128xf32>
    %57 = arith.addf %49, %56 : vector<32x128xf32>
    %c0_30 = arith.constant 0 : index
    %c0_31 = arith.constant 0 : index
    %58 = vector.load %arg14[%c0_30, %c0_31] : memref<32x128xf32, #tpu.memory_space<vmem>>, vector<32x128xf32>
    tpu.vector_store %arg14[%c0_30, %c0_31], %57 {strides = array<i32>} : memref<32x128xf32, #tpu.memory_space<vmem>>, vector<32x128xf32>,
    return
  }
  func.func @transform_0(%arg0: i32) -> (i32, i32) {
    %c0_i32 = arith.constant 0 : i32
    %c0_i32_0 = arith.constant 0 : i32
    return %c0_i32, %arg0 : i32, i32
  }
  func.func @transform_1(%arg0: i32) -> (i32, i32) {
    %c0_i32 = arith.constant 0 : i32
    %c0_i32_0 = arith.constant 0 : i32
    return %c0_i32, %arg0 : i32, i32
  }
  func.func @transform_2(%arg0: i32) -> (i32, i32) {
    %c0_i32 = arith.constant 0 : i32
    %c0_i32_0 = arith.constant 0 : i32
    return %c0_i32, %arg0 : i32, i32
  }
  func.func @transform_3(%arg0: i32) -> (i32, i32) {
    %c0_i32 = arith.constant 0 : i32
    %c0_i32_0 = arith.constant 0 : i32
    return %c0_i32, %arg0 : i32, i32
  }
  func.func @transform_4(%arg0: i32) -> (i32, i32) {
    %c0_i32 = arith.constant 0 : i32
    %c0_i32_0 = arith.constant 0 : i32
    %c0_i32_1 = arith.constant 0 : i32
    return %c0_i32, %c0_i32_0 : i32, i32
  }
  func.func @transform_5(%arg0: i32) -> (i32, i32) {
    %c0_i32 = arith.constant 0 : i32
    %c0_i32_0 = arith.constant 0 : i32
    %c0_i32_1 = arith.constant 0 : i32
    return %c0_i32, %c0_i32_0 : i32, i32
  }
  func.func @transform_6(%arg0: i32) -> (i32, i32) {
    %c0_i32 = arith.constant 0 : i32
    %c0_i32_0 = arith.constant 0 : i32
    %c0_i32_1 = arith.constant 0 : i32
    return %c0_i32, %c0_i32_0 : i32, i32
  }
  func.func @transform_7(%arg0: i32) -> (i32, i32) {
    %c0_i32 = arith.constant 0 : i32
    %c0_i32_0 = arith.constant 0 : i32
    %c0_i32_1 = arith.constant 0 : i32
    return %c0_i32, %c0_i32_0 : i32, i32
  }
  func.func @transform_8(%arg0: i32) -> (i32, i32) {
    %c0_i32 = arith.constant 0 : i32
    %c0_i32_0 = arith.constant 0 : i32
    %c0_i32_1 = arith.constant 0 : i32
    return %c0_i32, %c0_i32_0 : i32, i32
  }
  func.func @transform_9(%arg0: i32) -> (i32, i32) {
    %c0_i32 = arith.constant 0 : i32
    %c0_i32_0 = arith.constant 0 : i32
    %c0_i32_1 = arith.constant 0 : i32
    return %c0_i32, %c0_i32_0 : i32, i32
  }
  func.func @transform_10(%arg0: i32) -> (i32, i32) {
    %c0_i32 = arith.constant 0 : i32
    %c0_i32_0 = arith.constant 0 : i32
    %c0_i32_1 = arith.constant 0 : i32
    return %c0_i32, %c0_i32_0 : i32, i32
  }
  func.func @transform_11(%arg0: i32) -> (i32, i32) {
    %c0_i32 = arith.constant 0 : i32
    %c0_i32_0 = arith.constant 0 : i32
    %c0_i32_1 = arith.constant 0 : i32
    return %c0_i32, %c0_i32_0 : i32, i32
  }
  func.func @transform_12(%arg0: i32) -> (i32, i32) {
    %c0_i32 = arith.constant 0 : i32
    %c0_i32_0 = arith.constant 0 : i32
    return %c0_i32, %arg0 : i32, i32
  }
  func.func @transform_13(%arg0: i32) -> (i32, i32) {
    %c0_i32 = arith.constant 0 : i32
    %c0_i32_0 = arith.constant 0 : i32
    return %c0_i32, %arg0 : i32, i32
  }
}

</mosaic_0001>

<bundles_post_ra>
// kernel: gru_memory_updater.1
= control target key start
LH: loop header
LB: loop body
LE: loop exit
PB: predicated region body
PF: predicated region fallthrough
CT: control target
= control target key end

     0   :  { %v1422_v0 = vmov 0   ;;  %vm871_vm0 = vcmask 261120   ;;  %vm1105_vm1 = vcmask 130048   ;;  %s2036_s5 = inlined_call_operand.vmem [shape: f32[32,1], index: 5, kind: input, shape index: {}]   ;;  %s2037_s4 = inlined_call_operand.vmem [shape: f32[32,1], index: 4, kind: input, shape index: {}]   ;;  %s2038_s2 = inlined_call_operand.vmem [shape: f32[32,128], index: 2, kind: input, shape index: {}, may-alias: {2,12}]   ;;  %s2039_s8 = inlined_call_operand.vmem [shape: bf16[96,32], index: 8, kind: input, shape index: {}]   ;;  %s2040_s3 = inlined_call_operand.vmem [shape: bf16[16,128], index: 3, kind: input, shape index: {}]   ;;  %s2041_s7 = inlined_call_operand.vmem [shape: f32[96,1], index: 7, kind: input, shape index: {}]   ;;  %s2042_s10 = inlined_call_operand.vmem [shape: bf16[32,16], index: 10, kind: input, shape index: {}]   ;;  %s2043_s9 = inlined_call_operand.vmem [shape: f32[96,1], index: 9, kind: input, shape index: {}]   ;;  %s2044_s11 = inlined_call_operand.vmem [shape: f32[32,1], index: 11, kind: input, shape index: {}]   ;;  %s2045_s0 = inlined_call_operand.vmem [shape: f32[1,128], index: 0, kind: input, shape index: {}]   ;;  %s2046_s1 = inlined_call_operand.vmem [shape: bf16[32,128], index: 1, kind: input, shape index: {}]   ;;  %s2047_s6 = inlined_call_operand.vmem [shape: bf16[96,64], index: 6, kind: input, shape index: {}]   ;;  %s2048_s12 = inlined_call_operand.vmem [shape: f32[32,128], index: 12, kind: output, shape index: {0}, may-alias: {2,12}]   ;;  %s2049_s13 = inlined_call_operand.vmem [shape: f32[32,128], index: 13, kind: output, shape index: {1}]  }
   0x1   :  { %1344 = vset.pattern.permute.xlu1 %v1422_v0  ;;  %1343 = vset.pattern.permute.xlu0 %v1422_v0  ;;  %v79_v1 = vld [vmem:[%s2036_s5] sm:$0xff]  ;;  %v752_v4 = vld [vmem:[%s2038_s2 + $0x8] sm:$0xff]  ;;  %v753_v7 = vld [vmem:[%s2038_s2 + $0x10] sm:$0xff] }
   0x2   :  { %v44_v2 = vld [vmem:[%s2037_s4] sm:$0xff]  ;;  %85 = vperm.xlu1 %1344, %v79_v1   ;;  %v80_v6 = vld [vmem:[%s2036_s5 + $0x8] sm:$0xff]  ;;  %v754_v8 = vld [vmem:[%s2038_s2 + $0x18] sm:$0xff] }
   0x3   :  { %v751_v3 = vld [vmem:[%s2038_s2] sm:$0xff]  ;;  %51 = vperm.xlu0 %1343, %v44_v2   ;;  %v45_v9 = vld [vmem:[%s2037_s4 + $0x8] sm:$0xff]  ;;  %v768_v10 = vpack.c.bf16 %v754_v8, %v753_v7  ;;  %v47_v12 = vld [vmem:[%s2037_s4 + $0x18] sm:$0xff] }
   0x4   :  { %v767_v5 = vpack.c.bf16 %v752_v4, %v751_v3  ;;  %v1345_v11 = vld [vmem:[%s2039_s8] sm:$0xff]   ;;  %v46_v13 = vld [vmem:[%s2037_s4 + $0x10] sm:$0xff]  ;;  %v1346_v14 = vld [vmem:[%s2039_s8 + $0x8] sm:$0xff]  }
   0x5   :  { %1278 = vmatprep.mubr.msk.bf16.mxu1 %vm871_vm0, %v1345_v11  ;;  %v1347_v15 = vld [vmem:[%s2039_s8 + $0x10] sm:$0xff]   ;;  %v82_v16 = vld [vmem:[%s2036_s5 + $0x18] sm:$0xff]  ;;  %v1351_v18 = vld [vmem:[%s2040_s3] sm:$0xff]  }
   0x6   :  { %1274 = vmatprep.subr.bf16.mxu1 %v767_v5  ;;  %90 = vperm.xlu1 %1344, %v80_v6   ;;  %v81_v17 = vld [vmem:[%s2036_s5 + $0x10] sm:$0xff]  ;;  %v550_v19 = vld [vmem:[%s2041_s7 + $0x8] sm:$0xff]  ;;  %v549_v20 = vld [vmem:[%s2041_s7] sm:$0xff] }
   0x7   :  { %1275 = vmatpush3.bf16.msra.mxu1 %v767_v5  ;;  %56 = vperm.xlu0 %1343, %v45_v9   ;;  %v1348_v21 = vld [vmem:[%s2039_s8 + $0x18] sm:$0xff]   ;;  %v1349_v22 = vld [vmem:[%s2039_s8 + $0x20] sm:$0xff]   ;;  %v551_v24 = vld [vmem:[%s2041_s7 + $0x10] sm:$0xff] }
   0x8   :  { %1276 = vmatprep.subr.bf16.mxu1 %v768_v10  ;;  %v552_v23 = vld [vmem:[%s2041_s7 + $0x18] sm:$0xff]  ;;  %v770_v25 = vld [vmem:[%s2043_s9 + $0x8] sm:$0xff]  ;;  %v769_v26 = vld [vmem:[%s2043_s9] sm:$0xff] }
   0x9   :  { %v1350_v27 = vld [vmem:[%s2039_s8 + $0x28] sm:$0xff]   ;;  %v1352_v28 = vld [vmem:[%s2042_s10] sm:$0xff]   ;;  %v772_v29 = vld [vmem:[%s2043_s9 + $0x18] sm:$0xff] }
   0xa   :  { %66 = vperm.xlu1 %1344, %v47_v12   ;;  %v771_v30 = vld [vmem:[%s2043_s9 + $0x10] sm:$0xff]  ;;  %v554_v31 = vld [vmem:[%s2041_s7 + $0x28] sm:$0xff]  ;;  %v553_v32 = vld [vmem:[%s2041_s7 + $0x20] sm:$0xff] }
   0xb   :  { %1277 = vmatpush3.bf16.msra.mxu1 %v768_v10  ;;  %61 = vperm.xlu0 %1343, %v46_v13   ;;  %v1353_v33 = vld [vmem:[%s2042_s10 + $0x8] sm:$0xff]   ;;  %v556_v34 = vld [vmem:[%s2041_s7 + $0x38] sm:$0xff]  ;;  %v555_v35 = vld [vmem:[%s2041_s7 + $0x30] sm:$0xff] }
   0xc   :  { %1290 = vmatprep.subr.bf16.mxu1 %v1351_v18  ;;  %v774_v36 = vld [vmem:[%s2043_s9 + $0x28] sm:$0xff]  ;;  %v773_v37 = vld [vmem:[%s2043_s9 + $0x20] sm:$0xff]  ;;  %v776_v38 = vld [vmem:[%s2043_s9 + $0x38] sm:$0xff] }
   0xd   :  { %v775_v39 = vld [vmem:[%s2043_s9 + $0x30] sm:$0xff]  ;;  %v778_v40 = vld [vmem:[%s2043_s9 + $0x48] sm:$0xff]  ;;  %v777_v41 = vld [vmem:[%s2043_s9 + $0x40] sm:$0xff] }
   0xe   :  { %1279 = vmatmul.mubr.msk.bf16.vlgmr.msra.gmra.mrb[0].mxu1 %vm871_vm0, %v1346_v14  ;;  %100 = vperm.xlu1 %1344, %v82_v16   ;;  %v780_v42 = vld [vmem:[%s2043_s9 + $0x58] sm:$0xff]  ;;  %v779_v43 = vld [vmem:[%s2043_s9 + $0x50] sm:$0xff]  ;;  %v558_v44 = vld [vmem:[%s2041_s7 + $0x48] sm:$0xff] }
   0xf   :  { %1282 = vmatprep.mubr.msk.bf16.mxu1 %vm871_vm0, %v1347_v15  ;;  %95 = vperm.xlu0 %1343, %v81_v17   ;;  %v557_v45 = vld [vmem:[%s2041_s7 + $0x40] sm:$0xff]  ;;  %v560_v46 = vld [vmem:[%s2041_s7 + $0x58] sm:$0xff]  ;;  %v559_v47 = vld [vmem:[%s2041_s7 + $0x50] sm:$0xff] }
  0x10   :  { %1291 = vmatpush3.bf16.msra.mxu1 %v1351_v18  ;;  %v1066_v48 = vld [vmem:[%s2044_s11 + $0x8] sm:$0xff]  ;;  %v1065_v49 = vld [vmem:[%s2044_s11] sm:$0xff]  ;;  %v1068_v50 = vld [vmem:[%s2044_s11 + $0x18] sm:$0xff] }
  0x11   :  { %v1067_v51 = vld [vmem:[%s2044_s11 + $0x10] sm:$0xff]  ;;  %v1177_v52 = vld [vmem:[%s2045_s0] ss:$0 sm:$0xff]  ;;  %v1355_v54 = vld [vmem:[%s2046_s1 + $0x8] sm:$0xff]  }
  0x12   :  { %568 = vperm.xlu1 %1344, %v550_v19   ;;  %v1354_v53 = vld [vmem:[%s2046_s1] sm:$0xff]  }
  0x13   :  { %563 = vperm.xlu0 %1343, %v549_v20   ;;  %1254 = vmatprep.subr.bf16.mxu0 %v1354_v53 }
  0x14   :  { %1255 = vmatpush3.bf16.msra.mxu0 %v1354_v53 }
  0x15   :  { %1256 = vmatprep.subr.bf16.mxu0 %v1355_v54 }
  0x16   :  { %1283 = vmatmul.mubr.msk.bf16.gmra.mrb[4].mxu1 %vm871_vm0, %v1348_v21  ;;  %578 = vperm.xlu1 %1344, %v552_v23  }
  0x17   :  { %1286 = vmatprep.mubr.msk.bf16.mxu1 %vm871_vm0, %v1349_v22  ;;  %573 = vperm.xlu0 %1343, %v551_v24  }
  0x18   :  { %1257 = vmatpush3.bf16.msra.mxu0 %v1355_v54 }
  0x1a   :  { %788 = vperm.xlu1 %1344, %v770_v25  }
  0x1b   :  { %783 = vperm.xlu0 %1343, %v769_v26  }
  0x1e   :  { %1287 = vmatmul.mubr.msk.bf16.gmra.mrb[8].mxu1 %vm871_vm0, %v1350_v27  ;;  %798 = vperm.xlu1 %1344, %v772_v29   ;;  %v1423_v27 = vmov 683565275   ;;  %v1424_v29 = vmov 2475754826  }
  0x1f   :  { %1292 = vmatprep.mubr.msk.bf16.mxu1 %vm1105_vm1, %v1352_v28  ;;  %793 = vperm.xlu0 %1343, %v771_v30  }
  0x22   :  { %588 = vperm.xlu1 %1344, %v554_v31  }
  0x23   :  { %583 = vperm.xlu0 %1343, %v553_v32   ;;  %v1425_v32 = vmov 2131351028  }
  0x26   :  { %1293 = vmatmul.mubr.msk.bf16.vlgmr.msra.gmra.mrb[12].mxu1 %vm1105_vm1, %v1353_v33  ;;  %598 = vperm.xlu1 %1344, %v556_v34   ;;  %v1426_v34 = vmov 2102212464  }
  0x27   :  { %593 = vperm.xlu0 %1343, %v555_v35  }
  0x2a   :  { %808 = vperm.xlu1 %1344, %v774_v36   ;;  %v1427_v36 = vmov 920167782  }
  0x2b   :  { %803 = vperm.xlu0 %1343, %v773_v37  }
  0x2e   :  { %818 = vperm.xlu1 %1344, %v776_v38  }
  0x2f   :  { %813 = vperm.xlu0 %1343, %v775_v39  }
  0x32   :  { %828 = vperm.xlu1 %1344, %v778_v40  }
  0x33   :  { %823 = vperm.xlu0 %1343, %v777_v41  }
  0x36   :  { %838 = vperm.xlu1 %1344, %v780_v42  }
  0x37   :  { %833 = vperm.xlu0 %1343, %v779_v43   ;;  %v1428_v43 = vmov 1326507024  }
  0x3a   :  { %608 = vperm.xlu1 %1344, %v558_v44  }
  0x3b   :  { %603 = vperm.xlu0 %1343, %v557_v45  }
  0x3e   :  { %618 = vperm.xlu1 %1344, %v560_v46  }
  0x3f   :  { %613 = vperm.xlu0 %1343, %v559_v47  }
  0x42   :  { %1076 = vperm.xlu1 %1344, %v1066_v48  }
  0x43   :  { %1071 = vperm.xlu0 %1343, %v1065_v49  }
  0x46   :  { %1086 = vperm.xlu1 %1344, %v1068_v50  }
  0x47   :  { %1081 = vperm.xlu0 %1343, %v1067_v51  }
  0x81   :  { %v86_v55 = vpop.permute.xlu1 %85 }
  0x82   :  { %v52_v56 = vpop.permute.xlu0 %51 }
  0x83   :  { %v75_v57 = vmul.f32 %v1177_v52, %v52_v56 }
  0x85   :  { %v1661_v58 = vadd.f32 %v86_v55, %v75_v57  ;;  %v91_v59 = vpop.permute.xlu1 %90 }
  0x86   :  { %v57_v62 = vpop.permute.xlu0 %56 }
  0x87   :  { %v107_v60 = vand.u32 2147483647, %v1661_v58  ;;  %v110_v61 = vand.u32 2139095040, %v1661_v58  ;;  %v76_v63 = vmul.f32 %v1177_v52, %v57_v62 }
  0x89   :  { %v111_v0 = vshrl.u32 %v110_v61, 23  ;;  %v114_v1 = vand.u32 8388607, %v107_v60  ;;  %v1667_v2 = vadd.f32 %v91_v59, %v76_v63  ;;  %v67_v3 = vpop.permute.xlu1 %66 }
  0x8a   :  { %v62_v5 = vpop.permute.xlu0 %61  ;;  %v78_v9 = vmul.f32 %v1177_v52, %v67_v3 }
  0x8b   :  { %v1178_v4 = vadd.s32 4294967169, %v111_v0  ;;  %v210_v6 = vand.u32 2147483647, %v1667_v2  ;;  %v213_v7 = vand.u32 2139095040, %v1667_v2  ;;  %v115_v10 = vor.u32 8388608, %v114_v1 }
  0x8c   :  { %v77_v19 = vmul.f32 %v1177_v52, %v62_v5 }
  0x8d   :  { %v117_v8 = vadd.s32 1, %v1178_v4  ;;  %v214_v11 = vshrl.u32 %v213_v7, 23  ;;  %v217_v12 = vand.u32 8388607, %v210_v6  ;;  %v101_v13 = vpop.permute.xlu1 %100  ;;  %v1675_v22 = vshll.u32 %v115_v10, 8 }
  0x8e   :  { %v1673_v14 = vadd.f32 %v101_v13, %v78_v9  ;;  %v96_v15 = vpop.permute.xlu0 %95 }
  0x8f   :  { %vm118_vm2 = vcmp.gt.s32.totalorder %v117_v8, 0  ;;  %v1182_v17 = vadd.s32 4294967169, %v214_v11  ;;  %v218_v18 = vor.u32 8388608, %v217_v12  ;;  %v1678_v25 = vadd.f32 %v96_v15, %v77_v19 }
  0x90   :  { %v119_v16 = vsel %vm118_vm2, %v117_v8, 0  ;;  %v416_v24 = vand.u32 2147483647, %v1673_v14  ;;  %v419_v4 = vand.u32 2139095040, %v1673_v14 }
  0x91   :  { %v120_v20 = vshrl.u32 %v119_v16, 5  ;;  %v121_v21 = vand.u32 31, %v119_v16  ;;  %v220_v23 = vadd.s32 1, %v1182_v17  ;;  %v1682_v31 = vshll.u32 %v218_v18, 8 }
  0x92   :  { %v313_v5 = vand.u32 2147483647, %v1678_v25 }
  0x93   :  { %v122_v26 = vsub.s32 32, %v121_v21  ;;  %v124_v28 = vshll.u32 %v1423_v27, %v121_v21  ;;  %v127_v30 = vshll.u32 %v1424_v29, %v121_v21  ;;  %v130_v33 = vshll.u32 %v1425_v32, %v121_v21 }
  0x94   :  { %v133_v35 = vshll.u32 %v1426_v34, %v121_v21  ;;  %v136_v37 = vshll.u32 %v1427_v36, %v121_v21  ;;  %vm139_vm3 = vcmp.lt.s32.totalorder %v120_v20, 1  ;;  %vm140_vm4 = vcmp.lt.s32.totalorder %v120_v20, 2 }
  0x95   :  { %v125_v38 = vshrl.u32 %v1424_v29, %v122_v26  ;;  %v128_v39 = vshrl.u32 %v1425_v32, %v122_v26  ;;  %v131_v40 = vshrl.u32 %v1426_v34, %v122_v26  ;;  %v123_v41 = vshrl.u32 %v1423_v27, %v122_v26 }
  0x96   :  { %v134_v42 = vshrl.u32 %v1427_v36, %v122_v26  ;;  %v137_v44 = vshrl.u32 %v1428_v43, %v122_v26  ;;  %vm141_vm5 = vcmp.lt.s32.totalorder %v120_v20, 3  ;;  %vm221_vm6 = vcmp.gt.s32.totalorder %v220_v23, 0 }
  0x97   :  { %v126_v45 = vor.u32 %v125_v38, %v124_v28  ;;  %v129_v46 = vor.u32 %v128_v39, %v127_v30  ;;  %v132_v47 = vor.u32 %v131_v40, %v130_v33  ;;  %vm142_vm7 = vcmp.lt.s32.totalorder %v120_v20, 4 }
  0x98   :  { %v135_v48 = vor.u32 %v134_v42, %v133_v35  ;;  %v138_v49 = vor.u32 %v137_v44, %v136_v37  ;;  %v222_v50 = vsel %vm221_vm6, %v220_v23, 0  ;;  %v420_v39 = vshrl.u32 %v419_v4, 23 }
  0x99   :  { %v143_v51 = vsel %vm139_vm3, %v123_v41, %v126_v45  ;;  %v144_v52 = vsel %vm142_vm7, %v132_v47, 2102212464  ;;  %v147_v53 = vsel %vm139_vm3, %v126_v45, %v129_v46  ;;  %v151_v54 = vsel %vm139_vm3, %v129_v46, %v132_v47 }
  0x9a   :  { %v145_v55 = vsel %vm141_vm5, %v129_v46, %v144_v52  ;;  %v148_v56 = vsel %vm142_vm7, %v135_v48, 920167782  ;;  %v152_v57 = vsel %vm142_vm7, %v138_v49, 1326507024  ;;  %v223_v59 = vshrl.u32 %v222_v50, 5 }
  0x9b   :  { %v146_v61 = vsel %vm140_vm4, %v143_v51, %v145_v55  ;;  %v149_v62 = vsel %vm141_vm5, %v132_v47, %v148_v56  ;;  %v153_v63 = vsel %vm141_vm5, %v135_v48, %v152_v57  ;;  %v224_v0 = vand.u32 31, %v222_v50 }
  0x9c   :  { %v150_v1 = vsel %vm140_vm4, %v147_v53, %v149_v62  ;;  %v154_v3 = vsel %vm140_vm4, %v151_v54, %v153_v63  ;;  %v162_v11 = vmul.u32 %v1675_v22, %v146_v61  ;;  %vm242_vm8 = vcmp.lt.s32.totalorder %v223_v59, 1 }
  0x9d   :  { %v1705_v7 = vmul.u32.u64.low %v1675_v22, %v154_v3  ;;  %v1706_v8 = vmul.u32.u64.high %v1675_v22, %v154_v3, %v1705_v7  ;;  %v1709_v9 = vmul.u32.u64.low %v1675_v22, %v150_v1  ;;  %v1710_v10 = vmul.u32.u64.high %v1675_v22, %v150_v1, %v1709_v9 }
  0x9e   :  { %v225_v12 = vsub.s32 32, %v224_v0  ;;  %v227_v13 = vshll.u32 %v1423_v27, %v224_v0  ;;  %v230_v15 = vshll.u32 %v1424_v29, %v224_v0  ;;  %v233_v16 = vshll.u32 %v1425_v32, %v224_v0 }
  0x9f   :  { %v236_v17 = vshll.u32 %v1426_v34, %v224_v0  ;;  %v239_v18 = vshll.u32 %v1427_v36, %v224_v0  ;;  %vm244_vm9 = vcmp.lt.s32.totalorder %v223_v59, 3  ;;  %vm164_vm10 = vc.u32 %v1706_v8, %v1709_v9 }
  0xa0   :  { %v228_v19 = vshrl.u32 %v1424_v29, %v225_v12  ;;  %v231_v20 = vshrl.u32 %v1425_v32, %v225_v12  ;;  %v234_v21 = vshrl.u32 %v1426_v34, %v225_v12  ;;  %v165_v22 = vadd.s32 1, %v1710_v10 }
  0xa1   :  { %v226_v23 = vshrl.u32 %v1423_v27, %v225_v12  ;;  %v237_v26 = vshrl.u32 %v1427_v36, %v225_v12  ;;  %v240_v35 = vshrl.u32 %v1428_v43, %v225_v12  ;;  %vm245_vm11 = vcmp.lt.s32.totalorder %v223_v59, 4 }
  0xa2   :  { %v229_v28 = vor.u32 %v228_v19, %v227_v13  ;;  %v232_v30 = vor.u32 %v231_v20, %v230_v15  ;;  %v235_v33 = vor.u32 %v234_v21, %v233_v16  ;;  %v166_v37 = vsel %vm164_vm10, %v165_v22, %v1710_v10 }
  0xa3   :  { %v238_v38 = vor.u32 %v237_v26, %v236_v17  ;;  %v167_v40 = vadd.s32 %v166_v37, %v162_v11  ;;  %v241_v41 = vor.u32 %v240_v35, %v239_v18  ;;  %vm243_vm12 = vcmp.lt.s32.totalorder %v223_v59, 2 }
  0xa4   :  { %v246_v42 = vsel %vm242_vm8, %v226_v23, %v229_v28  ;;  %v247_v44 = vsel %vm245_vm11, %v235_v33, 2102212464  ;;  %v250_v46 = vsel %vm242_vm8, %v229_v28, %v232_v30  ;;  %v254_v48 = vsel %vm242_vm8, %v232_v30, %v235_v33 }
  0xa5   :  { %v248_v45 = vsel %vm244_vm9, %v232_v30, %v247_v44  ;;  %v251_v47 = vsel %vm245_vm11, %v238_v38, 920167782  ;;  %v168_v49 = vadd.s32 536870912, %v167_v40  ;;  %v255_v51 = vsel %vm245_vm11, %v241_v41, 1326507024 }
  0xa6   :  { %v252_v50 = vsel %vm244_vm9, %v235_v33, %v251_v47  ;;  %v249_v52 = vsel %vm243_vm12, %v246_v42, %v248_v45  ;;  %v256_v54 = vsel %vm244_vm9, %v238_v38, %v255_v51  ;;  %v1190_v55 = vadd.s32 4294967169, %v420_v39 }
  0xa7   :  { %v253_v53 = vsel %vm243_vm12, %v250_v46, %v252_v50  ;;  %v1733_v56 = vshrl.u32 %v168_v49, 30  ;;  %v257_v57 = vsel %vm243_vm12, %v254_v48, %v256_v54  ;;  %v423_v1 = vand.u32 8388607, %v416_v24 }
  0xa8   :  { %v1736_v61 = vmul.u32.u64.low %v1682_v31, %v253_v53  ;;  %v1737_v62 = vmul.u32.u64.high %v1682_v31, %v253_v53, %v1736_v61  ;;  %v1741_v63 = vmul.u32.u64.low %v1682_v31, %v257_v57  ;;  %v1742_v0 = vmul.u32.u64.high %v1682_v31, %v257_v57, %v1741_v63 }
  0xa9   :  { %v426_v3 = vadd.s32 1, %v1190_v55  ;;  %v170_v59 = vshll.u32 %v1733_v56, 30  ;;  %v316_v4 = vand.u32 2139095040, %v1678_v25  ;;  %v163_v7 = vadd.s32 %v1709_v9, %v1706_v8 }
  0xaa   :  { %v265_v10 = vmul.u32 %v1682_v31, %v249_v52  ;;  %v424_v11 = vor.u32 8388608, %v423_v1  ;;  %v268_v13 = vadd.s32 1, %v1737_v62  ;;  %vm267_vm14 = vc.u32 %v1742_v0, %v1736_v61 }
  0xab   :  { %vm427_vm13 = vcmp.gt.s32.totalorder %v426_v3, 0  ;;  %v1750_v12 = vsub.s32 %v167_v40, %v170_v59  ;;  %v317_v16 = vshrl.u32 %v316_v4, 23  ;;  %v1757_v19 = vand.u32 8388607, %v313_v5 }
  0xac   :  { %v428_v15 = vsel %vm427_vm13, %v426_v3, 0  ;;  %v269_v31 = vsel %vm267_vm14, %v268_v13, %v1737_v62  ;;  %v1761_v9 = vshll.u32 %v424_v11, 8  ;;  %vm109_vm6 = vcmp.lt.s32.totalorder %v1661_v58, 0 }
  0xad   :  { %v429_v17 = vshrl.u32 %v428_v15, 5  ;;  %v430_v18 = vand.u32 31, %v428_v15  ;;  %v173_v8 = vsub.s32 0, %v1750_v12  ;;  %v1186_v20 = vadd.s32 4294967169, %v317_v16 }
  0xae   :  { %v270_v21 = vadd.s32 %v269_v31, %v265_v10  ;;  %vm212_vm8 = vcmp.lt.s32.totalorder %v1667_v2, 0  ;;  %vm1828_vm9 = vcmp.le.f32.partialorder %v107_v60, 0.7853982  ;;  %vm1861_vm14 = vcmp.le.f32.partialorder %v210_v6, 0.7853982 }
  0xaf   :  { %v431_v22 = vsub.s32 32, %v430_v18  ;;  %v433_v23 = vshll.u32 %v1423_v27, %v430_v18  ;;  %v436_v26 = vshll.u32 %v1424_v29, %v430_v18  ;;  %v1179_v28 = vmin.u32 %v173_v8, %v1750_v12 }
  0xb0   :  { %v439_v30 = vshll.u32 %v1425_v32, %v430_v18  ;;  %v442_v33 = vshll.u32 %v1426_v34, %v430_v18  ;;  %v445_v35 = vshll.u32 %v1427_v36, %v430_v18  ;;  %v271_v37 = vadd.s32 536870912, %v270_v21 }
  0xb1   :  { %v432_v38 = vshrl.u32 %v1423_v27, %v431_v22  ;;  %v434_v39 = vshrl.u32 %v1424_v29, %v431_v22  ;;  %v437_v40 = vshrl.u32 %v1425_v32, %v431_v22  ;;  %v175_v41 = vclz %v1179_v28 }
  0xb2   :  { %v440_v42 = vshrl.u32 %v1426_v34, %v431_v22  ;;  %v443_v44 = vshrl.u32 %v1427_v36, %v431_v22  ;;  %v446_v45 = vshrl.u32 %v1428_v43, %v431_v22  ;;  %v1775_v46 = vshrl.u32 %v271_v37, 30 }
  0xb3   :  { %v435_v47 = vor.u32 %v434_v39, %v433_v23  ;;  %v438_v48 = vor.u32 %v437_v40, %v436_v26  ;;  %vm448_vm15 = vcmp.lt.s32.totalorder %v429_v17, 1  ;;  %v1180_v49 = vadd.s32 4294967294, %v175_v41 }
  0xb4   :  { %v441_v50 = vor.u32 %v440_v42, %v439_v30  ;;  %v444_v51 = vor.u32 %v443_v44, %v442_v33  ;;  %v447_v52 = vor.u32 %v446_v45, %v445_v35  ;;  %v273_v53 = vshll.u32 %v1775_v46, 30 }
  0xb5   :  { %vm449_vm0 = vcmp.lt.s32.totalorder %v429_v17, 2  ;;  %vm450_vm1 = vcmp.lt.s32.totalorder %v429_v17, 3  ;;  %vm451_vm2 = vcmp.lt.s32.totalorder %v429_v17, 4  ;;  %vm1181_vm3 = vcmp.lt.s32.totalorder %v1180_v49, 0 }
  0xb6   :  { %v452_v54 = vsel %vm448_vm15, %v432_v38, %v435_v47  ;;  %v453_v55 = vsel %vm451_vm2, %v441_v50, 2102212464  ;;  %v456_v57 = vsel %vm448_vm15, %v435_v47, %v438_v48  ;;  %v178_v62 = vsel %vm1181_vm3, 0, %v1180_v49 }
  0xb7   :  { %v274_v63 = vsub.s32 %v270_v21, %v273_v53  ;;  %v454_v1 = vsel %vm450_vm1, %v438_v48, %v453_v55  ;;  %v457_v3 = vsel %vm451_vm2, %v444_v51, 920167782  ;;  %v179_v59 = vsub.s32 32, %v178_v62 }
  0xb8   :  { %v180_v4 = vshll.u32 %v1750_v12, %v178_v62  ;;  %v183_v10 = vsub.s32 4294967266, %v178_v62  ;;  %v455_v11 = vsel %vm449_vm0, %v452_v54, %v454_v1  ;;  %v458_v15 = vsel %vm450_vm1, %v441_v50, %v457_v3 }
  0xb9   :  { %v276_v13 = vsub.s32 0, %v274_v63  ;;  %v460_v16 = vsel %vm448_vm15, %v438_v48, %v441_v50  ;;  %v461_v18 = vsel %vm451_vm2, %v447_v52, 1326507024  ;;  %v181_v8 = vshrl.u32 %v163_v7, %v179_v59 }
  0xba   :  { %v184_v31 = vadd.s32 127, %v183_v10  ;;  %v459_v21 = vsel %vm449_vm0, %v456_v57, %v458_v15  ;;  %v462_v22 = vsel %vm450_vm1, %v444_v51, %v461_v18  ;;  %v323_v38 = vadd.s32 1, %v1186_v20 }
  0xbb   :  { %v1183_v23 = vmin.u32 %v276_v13, %v274_v63  ;;  %v463_v26 = vsel %vm449_vm0, %v460_v16, %v462_v22  ;;  %v1792_v12 = vmul.u32.u64.low %v1761_v9, %v459_v21  ;;  %v1793_v28 = vmul.u32.u64.high %v1761_v9, %v459_v21, %v1792_v12 }
  0xbc   :  { %v182_v30 = vor.u32 %v181_v8, %v180_v4  ;;  %v185_v33 = vshll.u32 %v184_v31, 23  ;;  %v1797_v35 = vmul.u32.u64.low %v1761_v9, %v463_v26  ;;  %v1798_v37 = vmul.u32.u64.high %v1761_v9, %v463_v26, %v1797_v35 }
  0xbd   :  { %v278_v7 = vclz %v1183_v23  ;;  %v471_v40 = vmul.u32 %v1761_v9, %v455_v11  ;;  %v474_v17 = vadd.s32 1, %v1793_v28  ;;  %v321_v42 = vor.u32 8388608, %v1757_v19 }
  0xbe   :  { %v186_v39 = vor.u32 4788187, %v185_v33  ;;  %vm324_vm4 = vcmp.gt.s32.totalorder %v323_v38, 0  ;;  %v189_v45 = vcvt.s32.f32 %v182_v30  ;;  %vm473_vm5 = vc.u32 %v1798_v37, %v1792_v12 }
  0xbf   :  { %v1184_v41 = vadd.s32 4294967294, %v278_v7  ;;  %v325_v47 = vsel %vm324_vm4, %v323_v38, 0  ;;  %v475_v20 = vsel %vm473_vm5, %v474_v17, %v1793_v28  ;;  %v266_v9 = vadd.s32 %v1736_v61, %v1742_v0 }
  0xc0   :  { %v187_v44 = vand.u32 2147483647, %v186_v39  ;;  %v327_v48 = vand.u32 31, %v325_v47  ;;  %v476_v51 = vadd.s32 %v475_v20, %v471_v40  ;;  %v1809_v54 = vshll.u32 %v321_v42, 8 }
  0xc1   :  { %vm1185_vm7 = vcmp.lt.s32.totalorder %v1184_v41, 0  ;;  %v326_v1 = vshrl.u32 %v325_v47, 5  ;;  %vm651_vm1 = vcmask 523264  }
  0xc2   :  { %v190_v49 = vmul.f32 %v189_v45, %v187_v44  ;;  %v281_v50 = vsel %vm1185_vm7, 0, %v1184_v41  ;;  %v328_v53 = vsub.s32 32, %v327_v48  ;;  %v477_v62 = vadd.s32 536870912, %v476_v51 }
  0xc3   :  { %v282_v19 = vsub.s32 32, %v281_v50  ;;  %v286_v52 = vsub.s32 4294967266, %v281_v50  ;;  %v283_v57 = vshll.u32 %v274_v63, %v281_v50  ;;  %v330_v4 = vshll.u32 %v1423_v27, %v327_v48 }
  0xc4   :  { %v191_v55 = vxor.u32 2147483648, %v190_v49  ;;  %v331_v10 = vshrl.u32 %v1424_v29, %v328_v53  ;;  %v1813_v11 = vshrl.u32 %v477_v62, 30  ;;  %v329_v61 = vshrl.u32 %v1423_v27, %v328_v53 }
  0xc5   :  { %v284_v3 = vshrl.u32 %v266_v9, %v282_v19  ;;  %v287_v59 = vadd.s32 127, %v286_v52  ;;  %v333_v0 = vshll.u32 %v1424_v29, %v327_v48  ;;  %v334_v13 = vshrl.u32 %v1425_v32, %v328_v53 }
  0xc6   :  { %v336_v63 = vshll.u32 %v1425_v32, %v327_v48  ;;  %v337_v18 = vshrl.u32 %v1426_v34, %v328_v53  ;;  %v192_v8 = vsel %vm109_vm6, %v191_v55, %v190_v49  ;;  %v479_v31 = vshll.u32 %v1813_v11, 30 }
  0xc7   :  { %v285_v15 = vor.u32 %v284_v3, %v283_v57  ;;  %v288_v16 = vshll.u32 %v287_v59, 23  ;;  %v339_v21 = vshll.u32 %v1426_v34, %v327_v48  ;;  %v340_v27 = vshrl.u32 %v1427_v36, %v328_v53 }
  0xc8   :  { %v332_v22 = vor.u32 %v331_v10, %v330_v4  ;;  %v335_v23 = vor.u32 %v334_v13, %v333_v0  ;;  %v338_v26 = vor.u32 %v337_v18, %v336_v63  ;;  %v1832_v28 = vsub.s32 %v476_v51, %v479_v31  ;;  %v1356_v18 = vld [vmem:[%s2047_s6] sm:$0xff]  }
  0xc9   :  { %v289_v32 = vor.u32 4788187, %v288_v16  ;;  %v341_v30 = vor.u32 %v340_v27, %v339_v21  ;;  %v342_v33 = vshll.u32 %v1427_v36, %v327_v48  ;;  %v343_v35 = vshrl.u32 %v1428_v43, %v328_v53  ;;  %1262 = vmatprep.mubr.msk.bf16.mxu0 %vm651_vm1, %v1356_v18 }
  0xca   :  { %v292_v7 = vcvt.s32.f32 %v285_v15  ;;  %vm345_vm10 = vcmp.lt.s32.totalorder %v326_v1, 1  ;;  %vm348_vm11 = vcmp.lt.s32.totalorder %v326_v1, 4  ;;  %v482_v60 = vsub.s32 0, %v1832_v28 }
  0xcb   :  { %v290_v34 = vand.u32 2147483647, %v289_v32  ;;  %v344_v38 = vor.u32 %v343_v35, %v342_v33  ;;  %vm346_vm12 = vcmp.lt.s32.totalorder %v326_v1, 2  ;;  %v350_v39 = vsel %vm348_vm11, %v338_v26, 2102212464 }
  0xcc   :  { %vm347_vm13 = vcmp.lt.s32.totalorder %v326_v1, 3  ;;  %v353_v41 = vsel %vm345_vm10, %v332_v22, %v335_v23  ;;  %v354_v17 = vsel %vm348_vm11, %v341_v30, 920167782  ;;  %v1191_v42 = vmin.u32 %v482_v60, %v1832_v28 }
  0xcd   :  { %v293_v40 = vmul.f32 %v292_v7, %v290_v34  ;;  %v349_v36 = vsel %vm345_vm10, %v329_v61, %v332_v22  ;;  %v355_v44 = vsel %vm347_vm13, %v338_v26, %v354_v17  ;;  %v357_v43 = vsel %vm345_vm10, %v335_v23, %v338_v26 }
  0xce   :  { %v351_v47 = vsel %vm347_vm13, %v335_v23, %v350_v39  ;;  %v356_v20 = vsel %vm346_vm12, %v353_v41, %v355_v44  ;;  %v358_v48 = vsel %vm348_vm11, %v344_v38, 1326507024  ;;  %v484_v49 = vclz %v1191_v42 }
  0xcf   :  { %v294_v45 = vxor.u32 2147483648, %v293_v40  ;;  %v359_v9 = vsel %vm347_vm13, %v341_v30, %v358_v48  ;;  %v1843_v50 = vmul.u32.u64.low %v1809_v54, %v356_v20  ;;  %v1844_v51 = vmul.u32.u64.high %v1809_v54, %v356_v20, %v1843_v50 }
  0xd0   :  { %v360_v52 = vsel %vm346_vm12, %v357_v43, %v359_v9  ;;  %v193_v53 = vsub.s32 4, %v1733_v56  ;;  %v195_v55 = vsel %vm1828_vm9, %v1661_v58, %v192_v8  ;;  %v1192_v57 = vadd.s32 4294967294, %v484_v49 }
  0xd1   :  { %v295_v19 = vsel %vm212_vm8, %v294_v45, %v293_v40  ;;  %v1855_v62 = vmul.u32.u64.low %v1809_v54, %v360_v52  ;;  %v1856_v3 = vmul.u32.u64.high %v1809_v54, %v360_v52, %v1855_v62  ;;  %1362 = vcosq.f32 %v195_v55 }
  0xd2   :  { %v352_v59 = vsel %vm346_vm12, %v349_v36, %v351_v47  ;;  %1364 = vsinq.f32 %v195_v55  ;;  %v296_v10 = vsub.s32 4, %v1775_v46  ;;  %vm1193_vm15 = vcmp.lt.s32.totalorder %v1192_v57, 0 }
  0xd3   :  { %v371_v61 = vadd.s32 1, %v1844_v51  ;;  %v298_v0 = vsel %vm1861_vm14, %v1667_v2, %v295_v19  ;;  %v487_v13 = vsel %vm1193_vm15, 0, %v1192_v57  ;;  %v194_v1 = vsel %vm109_vm6, %v193_v53, %v1733_v56 }
  0xd4   :  { %1366 = vcosq.f32 %v298_v0  ;;  %v492_v15 = vsub.s32 4294967266, %v487_v13  ;;  %v368_v6 = vmul.u32 %v1809_v54, %v352_v59  ;;  %v488_v16 = vsub.s32 32, %v487_v13 }
  0xd5   :  { %vm370_vm0 = vc.u32 %v1856_v3, %v1843_v50  ;;  %v297_v63 = vsel %vm212_vm8, %v296_v10, %v1775_v46  ;;  %1368 = vsinq.f32 %v298_v0  ;;  %v196_v31 = vsel %vm1828_vm9, 0, %v194_v1 }
  0xd6   :  { %v493_v8 = vadd.s32 127, %v492_v15  ;;  %v372_v56 = vsel %vm370_vm0, %v371_v61, %v1844_v51  ;;  %v472_v54 = vadd.s32 %v1792_v12, %v1798_v37  ;;  %v299_v32 = vsel %vm1861_vm14, 0, %v297_v63 }
  0xd7   :  { %v373_v21 = vadd.s32 %v372_v56, %v368_v6  ;;  %v200_v23 = vand.u32 3, %v196_v31  ;;  %v489_v30 = vshll.u32 %v1832_v28, %v487_v13  ;;  %v303_v12 = vand.u32 3, %v299_v32 }
  0xd8   :  { %v494_v27 = vshll.u32 %v493_v8, 23  ;;  %v490_v46 = vshrl.u32 %v472_v54, %v488_v16  ;;  %vm199_vm7 = vweird.f32 %v1661_v58  ;;  %vm302_vm9 = vweird.f32 %v1667_v2 }
  0xd9   :  { %v374_v22 = vadd.s32 536870912, %v373_v21  ;;  %vm202_vm2 = vcmp.eq.s32.totalorder %v200_v23, 0  ;;  %vm205_vm3 = vcmp.eq.s32.totalorder %v200_v23, 2  ;;  %vm308_vm4 = vcmp.eq.s32.totalorder %v303_v12, 2 }
  0xda   :  { %v495_v29 = vor.u32 4788187, %v494_v27  ;;  %v491_v60 = vor.u32 %v490_v46, %v489_v30  ;;  %vm201_vm5 = vcmp.lt.s32.totalorder %v200_v23, 2  ;;  %vm305_vm6 = vcmp.eq.s32.totalorder %v303_v12, 0 }
  0xdb   :  { %v1363_v26 = vpop.eup %1362  ;;  %v1891_v35 = vshrl.u32 %v374_v22, 30  ;;  %vm304_vm8 = vcmp.lt.s32.totalorder %v303_v12, 2  ;;  %vm418_vm11 = vcmp.lt.s32.totalorder %v1673_v14, 0  ;;  %v369_v15 = vadd.s32 %v1843_v50, %v1856_v3 }
  0xdc   :  { %v1365_v33 = vpop.eup %1364  ;;  %v206_v34 = vxor.u32 2147483648, %v1363_v26  ;;  %v496_v42 = vand.u32 2147483647, %v495_v29  ;;  %v498_v47 = vcvt.s32.f32 %v491_v60  ;;  %vm1919_vm12 = vcmp.le.f32.partialorder %v416_v24, 0.7853982 }
  0xdd   :  { %v203_v37 = vxor.u32 2147483648, %v1365_v33  ;;  %v376_v38 = vshll.u32 %v1891_v35, 30  ;;  %v502_v23 = vsub.s32 4, %v1813_v11  ;;  %vm315_vm13 = vcmp.lt.s32.totalorder %v1678_v25, 0 }
  0xde   :  { %v1367_v7 = vpop.eup %1366  ;;  %v207_v40 = vsel %vm205_vm3, %v206_v34, %v1365_v33  ;;  %v499_v19 = vmul.f32 %v498_v47, %v496_v42  ;;  %vm1945_vm14 = vcmp.le.f32.partialorder %v313_v5, 0.7853982 }
  0xdf   :  { %v204_v39 = vsel %vm202_vm2, %v1363_v26, %v203_v37  ;;  %v309_v41 = vxor.u32 2147483648, %v1367_v7  ;;  %v1369_v17 = vpop.eup %1368  ;;  %v377_v36 = vsub.s32 %v373_v21, %v376_v38  ;;  %v503_v29 = vsel %vm418_vm11, %v502_v23, %v1813_v11 }
  0xe0   :  { %v306_v44 = vxor.u32 2147483648, %v1369_v17  ;;  %v208_v48 = vsel %vm201_vm5, %v204_v39, %v207_v40  ;;  %v500_v4 = vxor.u32 2147483648, %v499_v19  ;;  %v505_v40 = vsel %vm1919_vm12, 0, %v503_v29 }
  0xe1   :  { %v1894_v28 = vpop.f32.mrb[0].mxu1  ;;  %v310_v43 = vsel %vm308_vm4, %v309_v41, %v1369_v17  ;;  %v379_v20 = vsub.s32 0, %v377_v36  ;;  %v209_v55 = vsel %vm199_vm7, nan, %v208_v48  ;;  %v509_v17 = vand.u32 3, %v505_v40 }
  0xe2   :  { %v1896_v45 = vpop.f32.mrb[1].mxu1  ;;  %v307_v9 = vsel %vm305_vm6, %v1367_v7, %v306_v44  ;;  %v501_v1 = vsel %vm418_vm11, %v500_v4, %v499_v19  ;;  %v399_v7 = vsub.s32 4, %v1891_v35  ;;  %vm508_vm5 = vweird.f32 %v1673_v14 }
  0xe3   :  { %v1898_v49 = vpop.f32.mrb[2].mxu1  ;;  %v1187_v52 = vmin.u32 %v379_v20, %v377_v36  ;;  %v311_v53 = vsel %vm304_vm8, %v307_v9, %v310_v43  ;;  %v504_v31 = vsel %vm1919_vm12, %v1673_v14, %v501_v1  ;;  %vm511_vm15 = vcmp.eq.s32.totalorder %v509_v17, 0  ;;  %v1359_v14 = vld [vmem:[%s2047_s6 + $0x18] sm:$0xff]   ;;  %v1361_v1 = vld [vmem:[%s2047_s6 + $0x28] sm:$0xff]  }
  0xe4   :  { %v1901_v51 = vpop.f32.mrb[3].mxu1  ;;  %v312_v57 = vsel %vm302_vm9, nan, %v311_v53  ;;  %1370 = vcosq.f32 %v504_v31  ;;  %v400_v41 = vsel %vm315_vm13, %v399_v7, %v1891_v35  ;;  %vm514_vm0 = vcmp.eq.s32.totalorder %v509_v17, 2 }
  0xe5   :  { %v381_v62 = vclz %v1187_v52  ;;  %v523_v59 = vpack.c.bf16 %v312_v57, %v209_v55  ;;  %1372 = vsinq.f32 %v504_v31  ;;  %v402_v44 = vsel %vm1945_vm14, 0, %v400_v41 }
  0xe6   :  { %v406_v43 = vand.u32 3, %v402_v44  ;;  %vm510_vm2 = vcmp.lt.s32.totalorder %v509_v17, 2  ;;  %vm405_vm7 = vweird.f32 %v1678_v25 }
  0xe7   :  { %v1188_v10 = vadd.s32 4294967294, %v381_v62  ;;  %1258 = vmatprep.subr.bf16.mxu0 %v523_v59 }
  0xe8   :  { %1259 = vmatpush3.bf16.msra.mxu0 %v523_v59  ;;  %vm411_vm3 = vcmp.eq.s32.totalorder %v406_v43, 2  ;;  %vm408_vm4 = vcmp.eq.s32.totalorder %v406_v43, 0  ;;  %vm407_vm6 = vcmp.lt.s32.totalorder %v406_v43, 2 }
  0xe9   :  { %v1904_v61 = vpop.f32.mrb[4].mxu1  ;;  %vm1189_vm10 = vcmp.lt.s32.totalorder %v1188_v10, 0 }
  0xea   :  { %v1906_v58 = vpop.f32.mrb[5].mxu1  ;;  %v384_v13 = vsel %vm1189_vm10, 0, %v1188_v10  ;;  %v1357_v10 = vld [vmem:[%s2047_s6 + $0x8] sm:$0xff]  }
  0xeb   :  { %v1908_v0 = vpop.f32.mrb[6].mxu1  ;;  %v385_v6 = vsub.s32 32, %v384_v13  ;;  %v389_v16 = vsub.s32 4294967266, %v384_v13  ;;  %v386_v18 = vshll.u32 %v377_v36, %v384_v13  ;;  %v1358_v13 = vld [vmem:[%s2047_s6 + $0x10] sm:$0xff]  }
  0xec   :  { %v1911_v2 = vpop.f32.mrb[7].mxu1 }
  0xed   :  { %v387_v8 = vshrl.u32 %v369_v15, %v385_v6  ;;  %v390_v56 = vadd.s32 127, %v389_v16  ;;  %v564_v15 = vpop.permute.xlu0 %563  ;;  %v569_v6 = vpop.permute.xlu1 %568 }
  0xee   :  { %v1371_v11 = vpop.eup %1370 }
  0xef   :  { %v388_v54 = vor.u32 %v387_v8, %v386_v18  ;;  %v391_v21 = vshll.u32 %v390_v56, 23  ;;  %v1373_v5 = vpop.eup %1372  ;;  %v515_v36 = vxor.u32 2147483648, %v1371_v11 }
  0xf0   :  { %v512_v42 = vxor.u32 2147483648, %v1373_v5 }
  0xf1   :  { %v1926_v27 = vpop.f32.mrb[8].mxu1  ;;  %v392_v3 = vor.u32 4788187, %v391_v21  ;;  %v395_v22 = vcvt.s32.f32 %v388_v54  ;;  %v516_v20 = vsel %vm514_vm0, %v515_v36, %v1373_v5  ;;  %v574_v16 = vpop.permute.xlu0 %573 }
  0xf2   :  { %v1928_v50 = vpop.f32.mrb[9].mxu1  ;;  %v513_v47 = vsel %vm511_vm15, %v1371_v11, %v512_v42  ;;  %v579_v63 = vpop.permute.xlu1 %578 }
  0xf3   :  { %v1930_v32 = vpop.f32.mrb[10].mxu1  ;;  %v393_v46 = vand.u32 2147483647, %v392_v3  ;;  %v517_v52 = vsel %vm510_vm2, %v513_v47, %v516_v20 }
  0xf4   :  { %v1932_v24 = vpop.f32.mrb[11].mxu1  ;;  %v518_v57 = vsel %vm508_vm5, nan, %v517_v52 }
  0xf5   :  { %v396_v26 = vmul.f32 %v395_v22, %v393_v46  ;;  %v784_v18 = vpop.permute.xlu0 %783 }
  0xf6   :  { %v789_v8 = vpop.permute.xlu1 %788 }
  0xf7   :  { %v397_v30 = vxor.u32 2147483648, %v396_v26 }
  0xf9   :  { %v1935_v33 = vpop.f32.mrb[12].mxu1  ;;  %v398_v37 = vsel %vm315_vm13, %v397_v30, %v396_v26  ;;  %v794_v56 = vpop.permute.xlu0 %793 }
  0xfa   :  { %v1941_v34 = vpop.f32.mrb[13].mxu1  ;;  %v401_v38 = vsel %vm1945_vm14, %v1678_v25, %v398_v37  ;;  %v1360_v25 = vld [vmem:[%s2047_s6 + $0x20] sm:$0xff]   ;;  %v799_v31 = vpop.permute.xlu1 %798 }
  0xfb   :  { %v1950_v60 = vpop.f32.mrb[14].mxu1  ;;  %1374 = vcosq.f32 %v401_v38 }
  0xfc   :  { %v1955_v39 = vpop.f32.mrb[15].mxu1  ;;  %1376 = vsinq.f32 %v401_v38 }
  0xfd   :  { %v584_v54 = vpop.permute.xlu0 %583 }
  0xfe   :  { %v589_v21 = vpop.permute.xlu1 %588 }
 0x101   :  { %v594_v3 = vpop.permute.xlu0 %593 }
 0x102   :  { %v599_v46 = vpop.permute.xlu1 %598 }
 0x105   :  { %v1375_v48 = vpop.eup %1374  ;;  %v804_v30 = vpop.permute.xlu0 %803 }
 0x106   :  { %v1377_v9 = vpop.eup %1376  ;;  %v412_v19 = vxor.u32 2147483648, %v1375_v48  ;;  %v809_v11 = vpop.permute.xlu1 %808 }
 0x107   :  { %v409_v53 = vxor.u32 2147483648, %v1377_v9 }
 0x108   :  { %v413_v35 = vsel %vm411_vm3, %v412_v19, %v1377_v9 }
 0x109   :  { %v410_v55 = vsel %vm408_vm4, %v1375_v48, %v409_v53  ;;  %v814_v47 = vpop.permute.xlu0 %813 }
 0x10a   :  { %v414_v62 = vsel %vm407_vm6, %v410_v55, %v413_v35  ;;  %v819_v35 = vpop.permute.xlu1 %818 }
 0x10b   :  { %v415_v59 = vsel %vm405_vm7, nan, %v414_v62 }
 0x10c   :  { %v524_v4 = vpack.c.bf16 %v518_v57, %v415_v59 }
 0x10e   :  { %1260 = vmatprep.subr.bf16.mxu0 %v524_v4 }
 0x10f   :  { %1261 = vmatpush3.bf16.msra.mxu0 %v524_v4 }
 0x112   :  { %1263 = vmatmul.mubr.msk.bf16.vlgmr.msra.gmra.mrb[0].mxu0 %vm651_vm1, %v1357_v10 }
 0x113   :  { %1266 = vmatprep.mubr.msk.bf16.mxu0 %vm651_vm1, %v1358_v13  ;;  %v824_v13 = vpop.permute.xlu0 %823 }
 0x11a   :  { %1267 = vmatmul.mubr.msk.bf16.gmra.mrb[4].mxu0 %vm651_vm1, %v1359_v14 }
 0x11b   :  { %1270 = vmatprep.mubr.msk.bf16.mxu0 %vm651_vm1, %v1360_v25 }
 0x122   :  { %1271 = vmatmul.mubr.msk.bf16.gmra.mrb[8].mxu0 %vm651_vm1, %v1361_v1 }
 0x1e5   :  { %v1264_v22 = vpop.f32.mrb[0].mxu0 }
 0x1e6   :  { %v713_v23 = vadd.f32 %v1264_v22, %v574_v16  ;;  %v704_v26 = vpop.f32.mrb[1].mxu0 }
 0x1e7   :  { %v705_v29 = vadd.f32 %v704_v26, %v564_v15  ;;  %v1265_v12 = vpop.f32.mrb[2].mxu0 }
 0x1e8   :  { %v1297_v37 = vadd.f32 %v794_v56, %v713_v23  ;;  %v716_v7 = vadd.f32 %v1265_v12, %v579_v63  ;;  %v707_v38 = vpop.f32.mrb[3].mxu0 }
 0x1e9   :  { %v1300_v40 = vadd.f32 %v784_v18, %v705_v29  ;;  %v708_v5 = vadd.f32 %v707_v38, %v569_v6  ;;  %v829_v6 = vpop.permute.xlu1 %828 }
 0x1ea   :  { %v1298_v41 = vadd.f32 %v1297_v37, %v1894_v28  ;;  %v1303_v17 = vadd.f32 %v799_v31, %v716_v7 }
 0x1eb   :  { %v1301_v42 = vadd.f32 %v1300_v40, %v1896_v45  ;;  %v1306_v36 = vadd.f32 %v789_v8, %v708_v5 }
 0x1ec   :  { %v1222_v44 = vmul.f32 -1.442695, %v1298_v41  ;;  %v1304_v43 = vadd.f32 %v1303_v17, %v1898_v49 }
 0x1ed   :  { %v1220_v20 = vmul.f32 -1.442695, %v1301_v42  ;;  %v1307_v48 = vadd.f32 %v1306_v36, %v1901_v51  ;;  %v1268_v9 = vpop.f32.mrb[4].mxu0  ;;  %v839_v26 = vpop.permute.xlu1 %838 }
 0x1ee   :  { %1378 = vpow2.f32 %v1222_v44  ;;  %v1223_v19 = vmul.f32 -1.442695, %v1304_v43  ;;  %v729_v52 = vadd.f32 %v1268_v9, %v594_v3  ;;  %v720_v53 = vpop.f32.mrb[5].mxu0  ;;  %v957_v44 = vadd.f32 %v1928_v50, %v824_v13 }
 0x1ef   :  { %1380 = vpow2.f32 %v1220_v20  ;;  %v1221_v55 = vmul.f32 -1.442695, %v1307_v48  ;;  %v721_v28 = vadd.f32 %v720_v53, %v584_v54  ;;  %v1269_v57 = vpop.f32.mrb[6].mxu0  ;;  %v968_v20 = vadd.f32 %v1930_v32, %v839_v26 }
 0x1f0   :  { %1382 = vpow2.f32 %v1223_v19  ;;  %v1309_v45 = vadd.f32 %v814_v47, %v729_v52  ;;  %v732_v62 = vadd.f32 %v1269_v57, %v599_v46  ;;  %v723_v59 = vpop.f32.mrb[7].mxu0  ;;  %v960_v53 = vadd.f32 %v1932_v24, %v829_v6 }
 0x1f1   :  { %1384 = vpow2.f32 %v1221_v55  ;;  %v1312_v49 = vadd.f32 %v804_v30, %v721_v28  ;;  %v724_v4 = vadd.f32 %v723_v59, %v589_v21  ;;  %v609_v7 = vpop.permute.xlu1 %608 }
 0x1f2   :  { %v1310_v10 = vadd.f32 %v1309_v45, %v1904_v61  ;;  %v1315_v51 = vadd.f32 %v819_v35, %v732_v62 }
 0x1f3   :  { %v1313_v14 = vadd.f32 %v1312_v49, %v1906_v58  ;;  %v1318_v25 = vadd.f32 %v809_v11, %v724_v4  ;;  %v834_v58 = vpop.permute.xlu0 %833 }
 0x1f4   :  { %v1226_v1 = vmul.f32 -1.442695, %v1310_v10  ;;  %v1316_v15 = vadd.f32 %v1315_v51, %v1908_v0  ;;  %v965_v41 = vadd.f32 %v1926_v27, %v834_v58 }
 0x1f5   :  { %v1224_v16 = vmul.f32 -1.442695, %v1313_v14  ;;  %v1319_v63 = vadd.f32 %v1318_v25, %v1911_v2  ;;  %v1272_v18 = vpop.f32.mrb[8].mxu0  ;;  %v619_v52 = vpop.permute.xlu1 %618 }
 0x1f6   :  { %1386 = vpow2.f32 %v1226_v1  ;;  %v1227_v8 = vmul.f32 -1.442695, %v1316_v15  ;;  %v736_v56 = vpop.f32.mrb[9].mxu0 }
 0x1f7   :  { %1388 = vpow2.f32 %v1224_v16  ;;  %v1225_v31 = vmul.f32 -1.442695, %v1319_v63  ;;  %v1273_v54 = vpop.f32.mrb[10].mxu0  ;;  %v604_v29 = vpop.permute.xlu0 %603  ;;  %v1418_v63 = vld [vmem:[%s2038_s2 + $0x10] sm:$0xff] }
 0x1f8   :  { %v1379_v61 = vpop.eup %1378  ;;  %1390 = vpow2.f32 %v1227_v8  ;;  %v739_v21 = vpop.f32.mrb[11].mxu0  ;;  %v737_v35 = vadd.f32 %v736_v56, %v604_v29  ;;  %v748_v57 = vadd.f32 %v1273_v54, %v619_v52 }
 0x1f9   :  { %v1381_v3 = vpop.eup %1380  ;;  %v989_v46 = vadd.f32 1.0, %v1379_v61  ;;  %1392 = vpow2.f32 %v1225_v31  ;;  %v740_v62 = vadd.f32 %v739_v21, %v609_v7  ;;  %v1077_v13 = vpop.permute.xlu1 %1076  ;;  %v1419_v61 = vld [vmem:[%s2038_s2] sm:$0xff] }
 0x1fa   :  { %v1383_v22 = vpop.eup %1382  ;;  %v987_v0 = vadd.f32 1.0, %v1381_v3 }
 0x1fb   :  { %v1385_v23 = vpop.eup %1384  ;;  %1394 = vrcp.f32 %v989_v46  ;;  %v990_v2 = vadd.f32 1.0, %v1383_v22  ;;  %v614_v36 = vpop.permute.xlu0 %613 }
 0x1fc   :  { %1396 = vrcp.f32 %v987_v0  ;;  %v988_v30 = vadd.f32 1.0, %v1385_v23  ;;  %v745_v48 = vadd.f32 %v1272_v18, %v614_v36  ;;  %v1420_v23 = vld [vmem:[%s2038_s2 + $0x18] sm:$0xff] }
 0x1fd   :  { %1398 = vrcp.f32 %v990_v2  ;;  %v1087_v2 = vpop.permute.xlu1 %1086 }
 0x1fe   :  { %1400 = vrcp.f32 %v988_v30 }
 0x1ff   :  { %v1072_v24 = vpop.permute.xlu0 %1071 }
 0x200   :  { %v1387_v12 = vpop.eup %1386  ;;  %v1147_v30 = vadd.f32 %v1941_v34, %v1072_v24 }
 0x201   :  { %v1389_v37 = vpop.eup %1388  ;;  %v1017_v11 = vadd.f32 1.0, %v1387_v12 }
 0x202   :  { %v1391_v38 = vpop.eup %1390  ;;  %v1015_v5 = vadd.f32 1.0, %v1389_v37  ;;  %v1421_v37 = vld [vmem:[%s2038_s2 + $0x8] sm:$0xff] }
 0x203   :  { %v1393_v40 = vpop.eup %1392  ;;  %v1018_v17 = vadd.f32 1.0, %v1391_v38  ;;  %1402 = vrcp.f32 %v1017_v11  ;;  %v1082_v31 = vpop.permute.xlu0 %1081  ;;  %v1158_v38 = vadd.f32 %v1950_v60, %v1087_v2 }
 0x204   :  { %v1016_v43 = vadd.f32 1.0, %v1393_v40  ;;  %1404 = vrcp.f32 %v1015_v5  ;;  %v1155_v46 = vadd.f32 %v1935_v33, %v1082_v31  ;;  %v1150_v40 = vadd.f32 %v1955_v39, %v1077_v13 }
 0x205   :  { %v1395_v42 = vpop.eup %1394  ;;  %1406 = vrcp.f32 %v1018_v17 }
 0x206   :  { %v1397_v47 = vpop.eup %1396  ;;  %v1029_v9 = vmul.f32 %v1395_v42, %v965_v41  ;;  %1408 = vrcp.f32 %v1016_v43 }
 0x207   :  { %v1399_v19 = vpop.eup %1398  ;;  %v1027_v55 = vmul.f32 %v1397_v47, %v957_v44 }
 0x208   :  { %v1401_v27 = vpop.eup %1400  ;;  %v1033_v28 = vadd.f32 %v1029_v9, %v745_v48  ;;  %v1030_v45 = vmul.f32 %v1399_v19, %v968_v20 }
 0x209   :  { %v1031_v50 = vadd.f32 %v1027_v55, %v737_v35  ;;  %v1028_v59 = vmul.f32 %v1401_v27, %v960_v53 }
 0x20a   :  { %1410 = vtanh.f32 %v1033_v28  ;;  %v1034_v32 = vadd.f32 %v1030_v45, %v748_v57 }
 0x20b   :  { %1412 = vtanh.f32 %v1031_v50  ;;  %v1032_v49 = vadd.f32 %v1028_v59, %v740_v62 }
 0x20c   :  { %1414 = vtanh.f32 %v1034_v32 }
 0x20d   :  { %1416 = vtanh.f32 %v1032_v49  ;;  %v1403_v4 = vpop.eup %1402 }
 0x20e   :  { %v1405_v10 = vpop.eup %1404  ;;  %v1041_v25 = vsub.f32 1.0, %v1403_v4  ;;  %v1049_v18 = vmul.f32 %v1418_v63, %v1403_v4 }
 0x20f   :  { %v1407_v51 = vpop.eup %1406  ;;  %v1039_v15 = vsub.f32 1.0, %v1405_v10  ;;  %v1047_v21 = vmul.f32 %v1419_v61, %v1405_v10 }
 0x210   :  { %v1409_v14 = vpop.eup %1408  ;;  %v1042_v8 = vsub.f32 1.0, %v1407_v51  ;;  %v1050_v26 = vmul.f32 %v1420_v23, %v1407_v51 }
 0x211   :  { %v1040_v3 = vsub.f32 1.0, %v1409_v14  ;;  %v1048_v7 = vmul.f32 %v1421_v37, %v1409_v14 }
 0x214   :  { %v1411_v1 = vpop.eup %1410 }
 0x215   :  { %v1413_v6 = vpop.eup %1412  ;;  %v1045_v16 = vmul.f32 %v1411_v1, %v1041_v25 }
 0x216   :  { %v1415_v56 = vpop.eup %1414  ;;  %v1043_v54 = vmul.f32 %v1413_v6, %v1039_v15 }
 0x217   :  { %v1417_v58 = vpop.eup %1416  ;;  %v1053_v22 = vadd.f32 %v1049_v18, %v1045_v16  ;;  %v1046_v0 = vmul.f32 %v1415_v56, %v1042_v8 }
 0x218   :  { %v1051_v29 = vadd.f32 %v1047_v21, %v1043_v54  ;;  %v1044_v12 = vmul.f32 %v1417_v58, %v1040_v3 }
 0x219   :  { %1057 = vst [vmem:[%s2048_s12 + $0x10] sm:$0xff] %v1053_v22  ;;  %v1163_v33 = vadd.f32 %v1155_v46, %v1053_v22  ;;  %v1054_v11 = vadd.f32 %v1050_v26, %v1046_v0 }
 0x21a   :  { %1055 = vst [vmem:[%s2048_s12] sm:$0xff] %v1051_v29  ;;  %v1161_v34 = vadd.f32 %v1147_v30, %v1051_v29  ;;  %v1052_v5 = vadd.f32 %v1048_v7, %v1044_v12 }
 0x21b   :  { %1167 = vst [vmem:[%s2049_s13 + $0x10] sm:$0xff] %v1163_v33  ;;  %1058 = vst [vmem:[%s2048_s12 + $0x18] sm:$0xff] %v1054_v11  ;;  %v1164_v60 = vadd.f32 %v1158_v38, %v1054_v11 }
 0x21c   :  { %1165 = vst [vmem:[%s2049_s13] sm:$0xff] %v1161_v34  ;;  %1056 = vst [vmem:[%s2048_s12 + $0x8] sm:$0xff] %v1052_v5  ;;  %v1162_v39 = vadd.f32 %v1150_v40, %v1052_v5 }
 0x21d   :  { %1168 = vst [vmem:[%s2049_s13 + $0x18] sm:$0xff] %v1164_v60 }
 0x21e   :  { %1166 = vst [vmem:[%s2049_s13 + $0x8] sm:$0xff] %v1162_v39 }

</bundles_post_ra>
